<compile_context>
chip_gen: v7x
topology: tpu7x:2x2x1
jax: 0.10.0
libtpu: 0.0.40
codegen_flags: <defaults>
</compile_context>

<pallas_src>
import jax
import jax.numpy as jnp
from jax.experimental import pallas as pl
from jax.experimental.pallas import tpu as pltpu


def _cnntext_kernel(x_ref, wbank_ref, bconv_ref, mask_ref, wf_ref, bf_ref,
                    out_ref):
    TB, Lrows, CD = x_ref.shape
    T_out, Fpad = mask_ref.shape
    n_taps = wbank_ref.shape[1] // Fpad

    # One lane-dense MXU matmul against the fused filter bank
    # (bf16 inputs, f32 accumulation).
    y = jnp.dot(x_ref[...].reshape(TB * Lrows, CD), wbank_ref[...],
                preferred_element_type=jnp.float32)
    y = y.reshape(TB, Lrows, n_taps * Fpad)

    # im2col path: n_taps == 1 -> this slice is the whole buffer (no-op).
    # Shift path (D >= 128): sum of n_taps 128-lane-aligned shifted slices.
    acc = y[:, 0:T_out, 0:Fpad]
    for k in range(1, n_taps):
        acc = acc + y[:, k:k + T_out, k * Fpad:(k + 1) * Fpad]

    # fused bias + ReLU (f32 elementwise; valid on v5e's f32-only VPU)
    acc = jnp.maximum(acc + bconv_ref[...][None], 0.0)

    # Zero out invalid time positions / padding lanes, then max over time.
    # NOTE: masking to 0 before the max is only valid because the ReLU
    # output is >= 0; if the activation changes, switch to a -inf mask.
    acc = acc * mask_ref[...][None]
    feat = jnp.max(acc, axis=1)                       # (TB, Fpad): fused concat

    # TODO(synk): training-mode dropout (random mask + 1/(1-p) scaling) not
    # implemented; eval mode is identity.
    logits = jnp.dot(feat, wf_ref[...],
                     preferred_element_type=jnp.float32) + bf_ref[...]
    out_ref[...] = logits.astype(out_ref.dtype)       # (TB, Cpad) lane-dense


def _round_up(v, m):
    return (v + m - 1) // m * m


def _pick_batch_tile(B, per_sample_bytes, vmem_budget=24 << 20):
    """Batch tile: >= 8 sublanes, fits a VMEM live-state budget (safe on v7x's
    64 MiB), and always leaves >= 2 grid steps for pipelining / megacore."""
    cap = max(8, vmem_budget // max(per_sample_bytes, 1))
    tb = 8
    while tb * 2 <= min(cap, 256) and tb * 4 <= _round_up(B, 8):
        tb *= 2
    return tb


def cnn_text_forward(x, conv_ws, conv_bs, wf, bf, Ks):
    """x: (B, L, D).  conv_ws[i]: (K_i, D, Co).  conv_bs[i]: (1, Co).
    wf: (len(Ks)*Co, C).  bf: (1, C)."""
    B, L, D = x.shape
    Co = conv_ws[0].shape[-1]
    C = wf.shape[-1]
    nK = len(Ks)
    F = nK * Co
    Kmax, Kmin = max(Ks), min(Ks)
    assert L >= Kmax, "sequence length must be >= largest kernel size"

    Fpad = _round_up(F, 128)            # 128-lane aligned fused feature width
    Cpad = _round_up(max(C, 128), 128)  # lane-dense logits
    T = L - Kmin + 1                    # max number of conv output positions

    use_im2col = D < 128                # fold taps into the MXU contraction

    if use_im2col:
        # ---- im2col: LHS (B, Tpad, Kmax*D) against (Kmax*D, Fpad) bank ----
        Lrows = _round_up(T, 8)
        T_out = Lrows
        CD = Kmax * D
        n_taps = 1
        x_t = jnp.pad(x, ((0, 0), (0, (T + Kmax - 1) - L), (0, 0)))
        # x_col[b, t, k*D:(k+1)*D] = x[b, t+k, :]
        x_in = jnp.concatenate([x_t[:, k:k + T, :] for k in range(Kmax)],
                               axis=-1)                       # (B, T, Kmax*D)
        wbank = jnp.zeros((CD, Fpad), jnp.float32)
        for g, (K, w) in enumerate(zip(Ks, conv_ws)):
            for k in range(K):
                wbank = wbank.at[k * D:(k + 1) * D,
                                 g * Co:(g + 1) * Co].set(w[k])
    else:
        # ---- shift-add: one tap block per lane group, 128-aligned slices ----
        Lrows = _round_up(T + Kmax - 1, 8)
        T_out = T
        CD = D
        n_taps = Kmax
        x_in = x
        wbank = jnp.zeros((D, Kmax * Fpad), jnp.float32)
        for g, (K, w) in enumerate(zip(Ks, conv_ws)):
            for k in range(K):
                wbank = wbank.at[:, k * Fpad + g * Co:
                                 k * Fpad + (g + 1) * Co].set(w[k])

    # ---- batch tile / padding (>= 8 sublanes, >= 2 grid steps) ----
    per_sample = (2 * Lrows * CD * 2              # double-buffered bf16 LHS
                  + Lrows * n_taps * Fpad * 4     # f32 matmul result
                  + T_out * Fpad * 4              # f32 acc
                  + 2 * Cpad * 4)                 # output block
    TB = _pick_batch_tile(B, per_sample)
    Bpad = _round_up(max(B, 2 * TB), TB)
    grid = (Bpad // TB,)

    x_in = jnp.pad(x_in, ((0, Bpad - B), (0, Lrows - x_in.shape[1]), (0, 0)))
    x_in = x_in.astype(jnp.bfloat16)
    wbank = wbank.astype(jnp.bfloat16)

    # fused conv bias (padding lanes stay 0)
    bconv = jnp.zeros((1, Fpad), jnp.float32)
    for g, b in enumerate(conv_bs):
        bconv = bconv.at[0, g * Co:(g + 1) * Co].set(b.reshape(-1))

    # compile-time-constant validity mask, hoisted out of the kernel:
    # position t is valid for kernel-size group g iff t < L - K_g + 1.
    t_idx = jnp.arange(T_out)[:, None]
    mask = jnp.zeros((T_out, Fpad), jnp.float32)
    for g, K in enumerate(Ks):
        valid = (t_idx < (L - K + 1)).astype(jnp.float32)
        mask = mask.at[:, g * Co:(g + 1) * Co].set(
            jnp.broadcast_to(valid, (T_out, Co)))

    # FC weights (kept f32 for parity): rows 0..F-1 hold the concat features.
    wf_pad = jnp.zeros((Fpad, Cpad), jnp.float32).at[:F, :C].set(wf)
    bf_pad = jnp.zeros((1, Cpad), jnp.float32).at[:, :C].set(bf.reshape(1, C))

    flops = 2 * Bpad * Lrows * CD * (n_taps * Fpad) + 2 * Bpad * Fpad * Cpad
    bytes_accessed = (Bpad * Lrows * CD * 2 + CD * n_taps * Fpad * 2
                      + Fpad * 4 + T_out * Fpad * 4 + Fpad * Cpad * 4
                      + Cpad * 4 + Bpad * Cpad * 4)

    resident = (CD * n_taps * Fpad * 2 + Fpad * 4 + T_out * Fpad * 4
                + Fpad * Cpad * 4 + Cpad * 4)
    vmem_limit = int(min(64 << 20,
                         max(32 << 20, 2 * (TB * per_sample + 2 * resident))))

    out = pl.pallas_call(
        _cnntext_kernel,
        out_shape=jax.ShapeDtypeStruct((Bpad, Cpad), jnp.float32),
        grid=grid,
        in_specs=[
            pl.BlockSpec((TB, Lrows, CD), lambda i: (i, 0, 0)),      # LHS
            pl.BlockSpec((CD, n_taps * Fpad), lambda i: (0, 0)),     # filters
            pl.BlockSpec((1, Fpad), lambda i: (0, 0)),               # conv bias
            pl.BlockSpec((T_out, Fpad), lambda i: (0, 0)),           # time mask
            pl.BlockSpec((Fpad, Cpad), lambda i: (0, 0)),            # FC weight
            pl.BlockSpec((1, Cpad), lambda i: (0, 0)),               # FC bias
        ],
        out_specs=pl.BlockSpec((TB, Cpad), lambda i: (i, 0)),
        compiler_params=pltpu.CompilerParams(
            dimension_semantics=("parallel",),
            vmem_limit_bytes=vmem_limit),
        cost_estimate=pl.CostEstimate(flops=int(flops), transcendentals=0,
                                      bytes_accessed=int(bytes_accessed)),
    )(x_in, wbank, bconv, mask, wf_pad, bf_pad)
    return out[:B, :C]


def cnn_text_reference(x, conv_ws, conv_bs, wf, bf, Ks):
    """Pure-JAX f32 reference mirroring the PyTorch forward (eval mode)."""
    B, L, D = x.shape
    pooled = []
    for (K, w, b) in zip(Ks, conv_ws, conv_bs):
        Lout = L - K + 1
        acc = jnp.zeros((B, Lout, w.shape[-1]), jnp.float32)
        for k in range(K):
            acc = acc + jnp.einsum('bld,dc->blc', x[:, k:k + Lout, :], w[k])
        acc = jax.nn.relu(acc + b[0][None, None, :])
        pooled.append(jnp.max(acc, axis=1))
    feat = jnp.concatenate(pooled, axis=1)
    return feat @ wf + bf


if __name__ == "__main__":
    # Module hyperparameters (small, consistent with CNNText.__init__)
    embed_size = 32          # D
    num_class = 4            # C
    filter_size = 8          # Co
    kernel_size = [3, 4, 5]  # Ks
    B, L = 2, 16

    key = jax.random.PRNGKey(0)
    keys = jax.random.split(key, 2 + 2 * len(kernel_size) + 2)

    x = jax.random.normal(keys[0], (B, L, embed_size), dtype=jnp.float32)

    conv_ws, conv_bs = [], []
    for i, K in enumerate(kernel_size):
        bound = 1.0 / jnp.sqrt(jnp.float32(K * embed_size))
        conv_ws.append(jax.random.uniform(
            keys[1 + 2 * i], (K, embed_size, filter_size),
            minval=-bound, maxval=bound, dtype=jnp.float32))
        conv_bs.append(jax.random.uniform(
            keys[2 + 2 * i], (1, filter_size),
            minval=-bound, maxval=bound, dtype=jnp.float32))

    fin = len(kernel_size) * filter_size
    fbound = 1.0 / jnp.sqrt(jnp.float32(fin))
    wf = jax.random.uniform(keys[-2], (fin, num_class),
                            minval=-fbound, maxval=fbound, dtype=jnp.float32)
    bf = jax.random.uniform(keys[-1], (1, num_class),
                            minval=-fbound, maxval=fbound, dtype=jnp.float32)

    logits = cnn_text_forward(x, conv_ws, conv_bs, wf, bf, kernel_size)
    logits = jax.block_until_ready(logits)

    ref = cnn_text_reference(x, conv_ws, conv_bs, wf, bf, kernel_size)
    assert logits.shape == (B, num_class)
    # bf16 conv-matmul operands (f32 accumulation, f32 FC) -> loose tolerance.
    assert jnp.allclose(logits, ref, atol=2e-2, rtol=2e-2)

    print("KERNEL_OK")
</pallas_src>

<mosaic_0001>
module attributes {stable_mosaic.version = 11 : i64} {
  func.func @_cnntext_kernel(%arg0: i32, %arg1: memref<8x16x160xbf16, #tpu.memory_space<vmem>>, %arg2: memref<160x128xbf16, #tpu.memory_space<vmem>>, %arg3: memref<1x128xf32, #tpu.memory_space<vmem>>, %arg4: memref<16x128xf32, #tpu.memory_space<vmem>>, %arg5: memref<128x128xf32, #tpu.memory_space<vmem>>, %arg6: memref<1x128xf32, #tpu.memory_space<vmem>>, %arg7: memref<8x128xf32, #tpu.memory_space<vmem>>) attributes {dimension_semantics = [#tpu.dimension_semantics<parallel>], iteration_bounds = array<i64: 2>, scalar_prefetch = 0 : i64, scratch_operands = 0 : i64, tpu.core_type = #tpu.core_type<tc>, window_params = [{transform_indices = @transform_0, window_bounds = array<i64: 8, 16, 160>}, {pipeline_mode = #tpu.pipeline_mode<synchronous>, transform_indices = @transform_1, window_bounds = array<i64: 160, 128>}, {pipeline_mode = #tpu.pipeline_mode<synchronous>, transform_indices = @transform_2, window_bounds = array<i64: 1, 128>}, {pipeline_mode = #tpu.pipeline_mode<synchronous>, transform_indices = @transform_3, window_bounds = array<i64: 16, 128>}, {pipeline_mode = #tpu.pipeline_mode<synchronous>, transform_indices = @transform_4, window_bounds = array<i64: 128, 128>}, {pipeline_mode = #tpu.pipeline_mode<synchronous>, transform_indices = @transform_5, window_bounds = array<i64: 1, 128>}, {transform_indices = @transform_6, window_bounds = array<i64: 8, 128>}]} {
    %c0 = arith.constant 0 : index
    %c0_0 = arith.constant 0 : index
    %c0_1 = arith.constant 0 : index
    %0 = vector.load %arg1[%c0, %c0_0, %c0_1] : memref<8x16x160xbf16, #tpu.memory_space<vmem>>, vector<8x16x160xbf16>
    %1 = vector.shape_cast %0 : vector<8x16x160xbf16> to vector<128x160xbf16>
    %c0_2 = arith.constant 0 : index
    %c0_3 = arith.constant 0 : index
    %2 = vector.load %arg2[%c0_2, %c0_3] : memref<160x128xbf16, #tpu.memory_space<vmem>>, vector<160x128xbf16>
    %cst = arith.constant dense<0.000000e+00> : vector<128x128xf32>
    %3 = tpu.matmul %1, %2, %cst {dimension_numbers = #tpu.dot_dimension_numbers<[1], [0], [0], [1], [0, 0, 1, 1], [], []>} : vector<128x160xbf16>, vector<160x128xbf16>, vector<128x128xf32> -> vector<128x128xf32>
    %4 = vector.shape_cast %3 : vector<128x128xf32> to vector<8x16x128xf32>
    %c0_4 = arith.constant 0 : index
    %c0_5 = arith.constant 0 : index
    %5 = vector.load %arg3[%c0_4, %c0_5] : memref<1x128xf32, #tpu.memory_space<vmem>>, vector<1x128xf32>
    %6 = vector.shape_cast %5 : vector<1x128xf32> to vector<1x1x128xf32>
    %7 = vector.broadcast %6 : vector<1x1x128xf32> to vector<8x16x128xf32>
    %8 = arith.addf %4, %7 : vector<8x16x128xf32>
    %cst_6 = arith.constant 0.000000e+00 : f32
    %9 = vector.broadcast %cst_6 : f32 to vector<8x16x128xf32>
    %10 = arith.maximumf %8, %9 : vector<8x16x128xf32>
    %c0_7 = arith.constant 0 : index
    %c0_8 = arith.constant 0 : index
    %11 = vector.load %arg4[%c0_7, %c0_8] : memref<16x128xf32, #tpu.memory_space<vmem>>, vector<16x128xf32>
    %12 = vector.shape_cast %11 : vector<16x128xf32> to vector<1x16x128xf32>
    %13 = vector.broadcast %12 : vector<1x16x128xf32> to vector<8x16x128xf32>
    %14 = arith.mulf %10, %13 : vector<8x16x128xf32>
    %cst_9 = arith.constant dense<0xFF800000> : vector<8x128xf32>
    %15 = vector.multi_reduction <maximumf>, %14, %cst_9 [1] : vector<8x16x128xf32> to vector<8x128xf32>
    %c0_10 = arith.constant 0 : index
    %c0_11 = arith.constant 0 : index
    %16 = vector.load %arg5[%c0_10, %c0_11] : memref<128x128xf32, #tpu.memory_space<vmem>>, vector<128x128xf32>
    %cst_12 = arith.constant dense<0.000000e+00> : vector<8x128xf32>
    %17 = tpu.matmul %15, %16, %cst_12 {dimension_numbers = #tpu.dot_dimension_numbers<[1], [0], [0], [1], [0, 0, 1, 1], [], []>} : vector<8x128xf32>, vector<128x128xf32>, vector<8x128xf32> -> vector<8x128xf32>
    %c0_13 = arith.constant 0 : index
    %c0_14 = arith.constant 0 : index
    %18 = vector.load %arg6[%c0_13, %c0_14] : memref<1x128xf32, #tpu.memory_space<vmem>>, vector<1x128xf32>
    %19 = vector.broadcast %18 : vector<1x128xf32> to vector<8x128xf32>
    %20 = arith.addf %17, %19 : vector<8x128xf32>
    %c0_15 = arith.constant 0 : index
    %c0_16 = arith.constant 0 : index
    %21 = vector.load %arg7[%c0_15, %c0_16] : memref<8x128xf32, #tpu.memory_space<vmem>>, vector<8x128xf32>
    tpu.vector_store %arg7[%c0_15, %c0_16], %20 {strides = array<i32>} : memref<8x128xf32, #tpu.memory_space<vmem>>, vector<8x128xf32>,
    return
  }
  func.func @transform_0(%arg0: i32) -> (i32, i32, i32) {
    %c0_i32 = arith.constant 0 : i32
    %c0_i32_0 = arith.constant 0 : i32
    %c0_i32_1 = arith.constant 0 : i32
    return %arg0, %c0_i32, %c0_i32_0 : i32, i32, i32
  }
  func.func @transform_1(%arg0: i32) -> (i32, i32) {
    %c0_i32 = arith.constant 0 : i32
    %c0_i32_0 = arith.constant 0 : i32
    %c0_i32_1 = arith.constant 0 : i32
    return %c0_i32, %c0_i32_0 : i32, i32
  }
  func.func @transform_2(%arg0: i32) -> (i32, i32) {
    %c0_i32 = arith.constant 0 : i32
    %c0_i32_0 = arith.constant 0 : i32
    %c0_i32_1 = arith.constant 0 : i32
    return %c0_i32, %c0_i32_0 : i32, i32
  }
  func.func @transform_3(%arg0: i32) -> (i32, i32) {
    %c0_i32 = arith.constant 0 : i32
    %c0_i32_0 = arith.constant 0 : i32
    %c0_i32_1 = arith.constant 0 : i32
    return %c0_i32, %c0_i32_0 : i32, i32
  }
  func.func @transform_4(%arg0: i32) -> (i32, i32) {
    %c0_i32 = arith.constant 0 : i32
    %c0_i32_0 = arith.constant 0 : i32
    %c0_i32_1 = arith.constant 0 : i32
    return %c0_i32, %c0_i32_0 : i32, i32
  }
  func.func @transform_5(%arg0: i32) -> (i32, i32) {
    %c0_i32 = arith.constant 0 : i32
    %c0_i32_0 = arith.constant 0 : i32
    %c0_i32_1 = arith.constant 0 : i32
    return %c0_i32, %c0_i32_0 : i32, i32
  }
  func.func @transform_6(%arg0: i32) -> (i32, i32) {
    %c0_i32 = arith.constant 0 : i32
    %c0_i32_0 = arith.constant 0 : i32
    return %arg0, %c0_i32 : i32, i32
  }
}

</mosaic_0001>

<bundles_post_ra>
// kernel: tpu_custom_call.1
= control target key start
LH: loop header
LB: loop body
LE: loop exit
PB: predicated region body
PF: predicated region fallthrough
CT: control target
= control target key end

     0   :  { %s1799_s0 = inlined_call_operand.hbm [shape: bf16[16,16,160], index: 0, kind: input, shape index: {}]   ;;  %s1800_s1 = inlined_call_operand.hbm [shape: bf16[160,128], index: 1, kind: input, shape index: {}]   ;;  %s1801_s2 = inlined_call_operand.vmem [shape: f32[1,128], index: 2, kind: input, shape index: {}]   ;;  %s1802_s3 = inlined_call_operand.hbm [shape: f32[16,128], index: 3, kind: input, shape index: {}]   ;;  %s1803_s4 = inlined_call_operand.hbm [shape: f32[128,128], index: 4, kind: input, shape index: {}]   ;;  %s1804_s5 = inlined_call_operand.vmem [shape: f32[1,128], index: 5, kind: input, shape index: {}]   ;;  %s1805_s6 = inlined_call_operand.hbm [shape: f32[16,128], index: 6, kind: output, shape index: {}]  }
   0x1   :  { %1809 = sst [smem:[#allocation15_spill]] %s1800_s1 }
   0x2   :  { %11 = vsyncpa [#allocation3], 0 }
   0x3   :  { %13 = vsyncpa [#allocation3 + $0x1], 0 }
   0x4   :  { %14 = vsyncpa [#allocation6], 0 }
   0x5   :  { %15 = vsyncpa [#allocation9], 0 }
   0x6   :  { %16 = vsyncpa [#allocation4], 0 }
   0x7   :  { %18 = vsyncpa [#allocation4 + $0x1], 0  ;;  %s1461_s21 = smov 0   ;;  %s1463_s22 = smov 0  }
   0x8   :  { %s1465_s23 = smov 0   ;;  %s1467_s24 = smov 0  }
   0x9 LB: > { %s1482_s25 = sadd.s32 4294967295, %s1411_s24   ;;  %s950_s26 = sadd.s32 4294967294, %s1411_s24   ;;  %s1411_s24 = sphi %s1467_s24, %s1830_s24   ;;  %s1407_s23 = sphi %s1465_s23, %s1829_s23   ;;  %s1403_s22 = sphi %s1463_s22, %s1828_s22   ;;  %s1399_s21 = sphi %s1461_s21, %s1827_s21  }
   0xa   : > { %p44_p0 = scmp.ne.s32.totalorder %s1403_s22, %s1399_s21  ;;  %p1806_p1 = scmp.eq.s32.totalorder %s1482_s25, 0 }
   0xb   : > { %p179_p3 = scmp.eq.s32.totalorder %s950_s26, 1  ;;  %p951_p5 = scmp.ge.s32.totalorder %s1411_s24, 1 }
   0xc   : > { %p1491_p4 = por %p1806_p1, %p44_p0  ;;  %p186_p7 = scmp.lt.s32.totalorder %s1411_s24, 3 }
   0xd   : > { %p1496_p6 = por %p179_p3, %p44_p0  ;;  %s1413_s30 = smov [#allocation5]  }
   0xe   : > { %s1810_s27 = scalar_select %p1491_p4, 1, 0 }
   0xf   : > { %s1811_s28 = scalar_select %p1496_p6, 1, 0 }
  0x10   : > { %p1501_p8 = pnand %p951_p5, %p186_p7  ;;  %s198_s7 = sshll.u32 %s1413_s30, 4  ;;  %s1505_s7 = int_to_ptr.vmem [resolvable:$true] %s198_s7 }
  0x11   : > { %s1414_s9 = smov [#allocation7]   ;;  %s1814_s1 = sld [smem:[#allocation15_spill]] }
  0x12   : > { %s1812_s29 = scalar_select %p1501_p8, 1, 0 }
  0x13   : > { %p1120_p9 = pneg %p1501_p8  ;;  %s214_s10 = sshll.u32 %s1414_s9, 4  ;;  %s1516_s10 = int_to_ptr.vmem [resolvable:$true] %s214_s10 }
  0x15   : > { %p1512_p11 = pnand %p1120_p9, %p1806_p1 }
  0x17   : > { %s1223_s13 = scalar_lea.hbm %s1814_s1, 1280  ;;  %p1526_p13 = pneg %p1512_p11 }
  0x18   : > { %p1224_p12 = scmp.ne.s32.totalorder %s1814_s1, %s1223_s13  ;;  %p1230_p5 = scmp.lt.u32.totalorder %s1223_s13, %s1814_s1 }
  0x1a   : > { %p1226_p0 = pnand %p1526_p13, %p1224_p12 }
  0x1c   : > { %p1227_p3 = pneg %p1226_p0 }
  0x1e   : > { %p1232_p7 = pnand %p1230_p5, %p1227_p3 }
  0x20   : > { %1235 = shalt.err (!%p1232_p7)
}
  0x21   : > { %s1236_s19 = scalar_lea.vmem %s1505_s7, 1280  ;;  %p1244_p2 = scmp.lt.s32.totalorder %s1505_s7, %s1505_s7 }
  0x22   : > { %p1237_p9 = scmp.ne.s32.totalorder %s1505_s7, %s1236_s19  ;;  %p1245_p6 = scmp.lt.s32.totalorder %s1236_s19, %s1236_s19 }
  0x24   : > { %p1239_p10 = pnand %p1237_p9, %p1526_p13  ;;  %p1246_p12 = por %p1245_p6, %p1244_p2 }
  0x26   : > { %p1240_p1 = pneg %p1239_p10 }
  0x28   : > { %p1247_p0 = pnand %p1246_p12, %p1240_p1 }
  0x2a   : > { %1250 = shalt.err (!%p1247_p0)
}
  0x2b   : > { %s1415_s20 = smov 64   ;;  %s1416_s26 = smov 4  }
  0x2c   : > { %1123 = dma.hbm_to_vmem [thread:$0]  (!%p1512_p11), %s1814_s1, 1280, %s1505_s7, [#allocation6], %s1415_s20, %s1415_s20, %s1416_s26  }
  0x2d   : > { %s1251_s13 = scalar_lea.hbm %s1802_s3, 256 }
  0x2e   : > { %p1252_p2 = scmp.ne.s32.totalorder %s1802_s3, %s1251_s13  ;;  %p1258_p10 = scmp.lt.u32.totalorder %s1251_s13, %s1802_s3 }
  0x30   : > { %p1254_p1 = pnand %p1252_p2, %p1526_p13 }
  0x32   : > { %p1255_p6 = pneg %p1254_p1 }
  0x34   : > { %p1260_p3 = pnand %p1258_p10, %p1255_p6 }
  0x36   : > { %1263 = shalt.err (!%p1260_p3)
}
  0x37   : > { %s1264_s7 = scalar_lea.vmem %s1516_s10, 256  ;;  %p1272_p12 = scmp.lt.s32.totalorder %s1516_s10, %s1516_s10 }
  0x38   : > { %p1265_p5 = scmp.ne.s32.totalorder %s1516_s10, %s1264_s7  ;;  %p1273_p0 = scmp.lt.s32.totalorder %s1264_s7, %s1264_s7 }
  0x3a   : > { %p1267_p7 = pnand %p1265_p5, %p1526_p13  ;;  %p1274_p2 = por %p1273_p0, %p1272_p12 }
  0x3c   : > { %p1268_p9 = pneg %p1267_p7 }
  0x3e   : > { %p1275_p1 = pnand %p1274_p2, %p1268_p9 }
  0x40   : > { %1278 = shalt.err (!%p1275_p1)
}
  0x41   : > { %s1417_s19 = smov 128   ;;  %s1418_s20 = smov 8  }
  0x42   : > { %1126 = dma.hbm_to_vmem [thread:$0]  (!%p1512_p11), %s1802_s3, 256, %s1516_s10, [#allocation6], %s1417_s19, %s1417_s19, %s1418_s20  }
  0x43   : > { %s1419_s9 = smov [#allocation8]   ;;  %s1574_s12 = sadd.s32 1, %s1411_s24  }
  0x44   : > { %s227_s11 = sshll.u32 %s1419_s9, 4  ;;  %s1279_s15 = scalar_lea.hbm %s1803_s4, 2048  ;;  %s228_s11 = int_to_ptr.vmem [resolvable:$true] %s227_s11 }
  0x45   : > { %p1280_p6 = scmp.ne.s32.totalorder %s1803_s4, %s1279_s15  ;;  %p1286_p5 = scmp.lt.u32.totalorder %s1279_s15, %s1803_s4 }
  0x47   : > { %p1282_p10 = pnand %p1280_p6, %p1526_p13 }
  0x49   : > { %p1283_p3 = pneg %p1282_p10 }
  0x4b   : > { %p1288_p7 = pnand %p1286_p5, %p1283_p3 }
  0x4d   : > { %1291 = shalt.err (!%p1288_p7)
}
  0x4e   : > { %s1292_s10 = scalar_lea.vmem %s228_s11, 2048  ;;  %p1300_p2 = scmp.lt.s32.totalorder %s228_s11, %s228_s11 }
  0x4f   : > { %p1293_p9 = scmp.ne.s32.totalorder %s228_s11, %s1292_s10  ;;  %p1301_p1 = scmp.lt.s32.totalorder %s1292_s10, %s1292_s10 }
  0x51   : > { %p1295_p12 = pnand %p1293_p9, %p1526_p13  ;;  %p1302_p4 = por %p1301_p1, %p1300_p2 }
  0x53   : > { %p1296_p0 = pneg %p1295_p12 }
  0x55   : > { %p1303_p8 = pnand %p1302_p4, %p1296_p0 }
  0x57   : > { %1306 = shalt.err (!%p1303_p8)
}
  0x58   : > { %1129 = dma.hbm_to_vmem [thread:$0]  (!%p1512_p11), %s1803_s4, 2048, %s228_s11, [#allocation9], %s1417_s19, %s1417_s19, %s1418_s20  }
  0x59   : > { %s28_s16 = ssub.s32 %s1411_s24, %s1574_s12  ;;  %s31_s8 = sadd.s32 1, %s1407_s23 }
  0x5a   : > { %p29_p4 = scmp.eq.s32.totalorder %s28_s16, 0  ;;  %p38_p8 = scmp.ne.s32.totalorder %s1407_s23, %s1403_s22 }
  0x5b   : > { %p39_p13 = scmp.eq.s32.totalorder %s1411_s24, 0  ;;  %p1141_p6 = scmp.lt.s32.totalorder %s1411_s24, 2 }
  0x5c   : > { %s1605_s30 = scalar_select %p29_p4, %s1407_s23, %s31_s8  }
  0x5d   : > { %p40_p10 = por %p39_p13, %p38_p8  ;;  %p1816_p3 = scmp.eq.s32.totalorder %s1482_s25, 1 }
  0x5e   : > { %s244_s13 = sand.u32 1, %s1407_s23   ;;  %s1007_s14 = sshll.u32 %s1411_s24, 11 }
  0x5f   : > { %p1609_p5 = por %p1816_p3, %p38_p8  ;;  %s956_s15 = sshll.u32 %s244_s13, 7 }
  0x60   : > { %s1618_s11 = scalar_lea.hbm %s1799_s0, %s1007_s14  ;;  %s248_s7 = scalar_lea.vmem [#allocation2], %s956_s15 }
  0x61   : > { %s256_s10 = sshll.u32 %s248_s7, 4  ;;  %p1620_p11 = pnand %p1141_p6, %p40_p10  ;;  %s1624_s10 = int_to_ptr.vmem [resolvable:$true] %s256_s10 }
  0x62   : > { %s1626_s26 = scalar_lea.sflag [#allocation3], %s244_s13  ;;  %s1307_s16 = scalar_lea.hbm %s1618_s11, 2048 }
  0x63   : > { %p1308_p7 = scmp.ne.s32.totalorder %s1618_s11, %s1307_s16  ;;  %p1309_p9 = pneg %p1620_p11 }
  0x64   : > { %s1312_s15 = scalar_lea.hbm %s1799_s0, 4096  ;;  %p1313_p2 = scmp.lt.u32.totalorder %s1618_s11, %s1799_s0 }
  0x65   : > { %p1310_p12 = pnand %p1309_p9, %p1308_p7  ;;  %p1314_p1 = scmp.lt.u32.totalorder %s1312_s15, %s1307_s16 }
  0x66   : > { %p1316_p8 = scmp.lt.u32.totalorder %s1307_s16, %s1618_s11 }
  0x67   : > { %p1311_p0 = pneg %p1310_p12  ;;  %p1315_p4 = por %p1314_p1, %p1313_p2 }
  0x69   : > { %p1317_p13 = por %p1316_p8, %p1315_p4 }
  0x6b   : > { %p1318_p6 = pnand %p1317_p13, %p1311_p0 }
  0x6d   : > { %1321 = shalt.err (!%p1318_p6)
}
  0x6e   : > { %s1322_s13 = scalar_lea.vmem %s1624_s10, 2048  ;;  %s1420_s7 = smov [#allocation2]  }
  0x6f   : > { %p1323_p10 = scmp.ne.s32.totalorder %s1624_s10, %s1322_s13  ;;  %s1327_s8 = sshll.u32 %s1420_s7, 4  ;;  %s1328_s8 = int_to_ptr.vmem [resolvable:$false] %s1327_s8 }
  0x70   : > { %s1329_s14 = scalar_lea.vmem %s1328_s8, 4096  ;;  %p1330_p12 = scmp.lt.s32.totalorder %s1624_s10, %s1328_s8 }
  0x71   : > { %p1325_p3 = pnand %p1323_p10, %p1309_p9  ;;  %p1331_p2 = scmp.lt.s32.totalorder %s1329_s14, %s1322_s13 }
  0x73   : > { %p1326_p7 = pneg %p1325_p3  ;;  %p1332_p1 = por %p1331_p2, %p1330_p12 }
  0x75   : > { %p1333_p4 = pnand %p1332_p1, %p1326_p7 }
  0x77   : > { %1336 = shalt.err (!%p1333_p4)
}
  0x78   : > { %1133 = dma.hbm_to_vmem [thread:$0]  (!%p1620_p11), %s1618_s11, 2048, %s1624_s10, %s1626_s26, %s1417_s19, %s1417_s19, %s1418_s20  }
  0x79   : > { %p1819_p9 = scmp.ne.s32.totalorder %s1812_s29, 0 }
  0x7a   : > { %s1660_s16 = sand.u32 (!%p1819_p9), 1, %s1403_s22   ;;  %p1820_p0 = scmp.ne.s32.totalorder (!%p1819_p9), %s1810_s27, 0 }
  0x7b   : > { %268 = sbr.rel (%p1819_p9) target bundleno = 670 (0x29e), region = 44  ;;  %s961_s15 = sshll.u32 (!%p1819_p9), %s1660_s16, 7 }
  0x7c   : > { %s271_s17 = scalar_lea.sflag (!%p1819_p9), [#allocation3], %s1660_s16  ;;  %s1664_s18 = scalar_lea.vmem (!%p1819_p9), [#allocation2], %s961_s15 }
  0x82   : > { %1382 = dma.done.wait (%p1820_p0), %s271_s17, 2048  }
  0x83   : > { %1384 = vsyncadd (%p1820_p0), %s271_s17, 4294965248  ;;  %p1821_p11 = scmp.eq.s32.totalorder %s1482_s25, 0 }
  0x85   : > { %1386 = dma.done.wait (%p1821_p11), [#allocation6], 1536   ;;  %p1822_p8 = pmov %p1821_p11 }
  0x87   : > { %1388 = vsyncadd (%p1822_p8), [#allocation6], 4294965760  ;;  %p1823_p13 = pmov %p1822_p8 }
  0x88   : > { %p1824_p6 = pmov %p1822_p8 }
  0x89   : > { %1390 = dma.done.wait (%p1823_p13), [#allocation9], 2048  }
  0x8a   : > { %1392 = vsyncadd (%p1824_p6), [#allocation9], 4294965248  ;;  %v1421_v0 = vmov 0   ;;  %v1189_v1 = vld [vmem:[#allocation5] sm:$0xff]   ;;  %v1190_v2 = vld [vmem:[#allocation5 + $0x8] sm:$0xff]   ;;  %vm485_vm0 = vcmask 261120  }
  0x8b   : > { %510 = vmatprep.subr.bf16.mxu0 %v1421_v0  ;;  %1084 = vmatprep.subr.bf16.mxu1 %v1421_v0  ;;  %v1191_v3 = vld [vmem:[#allocation5 + $0x10] sm:$0xff]   ;;  %v1192_v4 = vld [vmem:[#allocation5 + $0x18] sm:$0xff]   ;;  %v1201_v5 = vld [vmem:[%s1664_s18 + $0x4] ss:$8 sps:$4 sm:$0xff]   ;;  %v1422_v30 = vmov 0.0|0.0   ;;  %vm1423_vm1 = vmmov 0  }
  0x8c   : > { %511 = vmatpush1.bf16.msra.mxu0 %v1189_v1  ;;  %1094 = vmatpush1.bf16.msra.mxu1 %v1189_v1  ;;  %v1204_v6 = vld [vmem:[%s1664_s18 + $0x44] ss:$8 sps:$4 sm:$0xff]   ;;  %v1195_v9 = vld [vmem:[#allocation5 + $0x30] sm:$0xff]   ;;  %v1196_v10 = vld [vmem:[#allocation5 + $0x38] sm:$0xff]   ;;  %v1424_v52 = vmov 0.0   ;;  %vm751_vm2 = vcmask 1041409  }
  0x8d   : > { %512 = vmatprep.subr.bf16.mxu0 %v1421_v0  ;;  %1085 = vmatprep.subr.bf16.mxu1 %v1421_v0  ;;  %v1193_v7 = vld [vmem:[#allocation5 + $0x20] sm:$0xff]   ;;  %v1194_v8 = vld [vmem:[#allocation5 + $0x28] sm:$0xff]   ;;  %v1205_v15 = vld [vmem:[%s1664_s18 + $0x14] ss:$8 sps:$4 sm:$0xff]   ;;  %vm753_vm3 = vcmask 1042434   ;;  %vm755_vm4 = vcmask 1043459  }
  0x8e   : > { %992 = vmatprep.mubr.msk.bf16.mxu0 %vm485_vm0, %v1201_v5  ;;  %996 = vmatprep.mubr.msk.bf16.mxu1 %vm485_vm0, %v1204_v6  ;;  %v1197_v11 = vld [vmem:[#allocation5 + $0x40] sm:$0xff]   ;;  %v1198_v12 = vld [vmem:[#allocation5 + $0x48] sm:$0xff]   ;;  %v1207_v16 = vld [vmem:[%s1664_s18 + $0x54] ss:$8 sps:$4 sm:$0xff]   ;;  %vm757_vm5 = vcmask 1044484   ;;  %vm759_vm6 = vcmask 1045509  }
  0x8f   : > { %v1199_v13 = vld [vmem:[%s1664_s18] ss:$8 sps:$4 sm:$0xff]   ;;  %v1209_v17 = vld [vmem:[%s1664_s18 + $0x10] ss:$8 sps:$4 sm:$0xff]   ;;  %v1211_v19 = vld [vmem:[%s1664_s18 + $0x24] ss:$8 sps:$4 sm:$0xff]  }
  0x90   : > { %513 = vmatpush1.bf16.msra.mxu0 %v1190_v2  ;;  %1095 = vmatpush1.bf16.msra.mxu1 %v1190_v2  ;;  %v1202_v14 = vld [vmem:[%s1664_s18 + $0x40] ss:$8 sps:$4 sm:$0xff]   ;;  %v1210_v18 = vld [vmem:[%s1664_s18 + $0x50] ss:$8 sps:$4 sm:$0xff]   ;;  %v1213_v20 = vld [vmem:[%s1664_s18 + $0x64] ss:$8 sps:$4 sm:$0xff]  }
  0x91   : > { %514 = vmatprep.subr.bf16.mxu0 %v1421_v0  ;;  %1086 = vmatprep.subr.bf16.mxu1 %v1421_v0  ;;  %v1215_v21 = vld [vmem:[%s1664_s18 + $0x20] ss:$8 sps:$4 sm:$0xff]   ;;  %v1217_v23 = vld [vmem:[%s1664_s18 + $0x34] ss:$8 sps:$4 sm:$0xff]   ;;  %v1221_v25 = vld [vmem:[%s1664_s18 + $0x30] ss:$8 sps:$4 sm:$0xff]  }
  0x92   : > { %v1216_v22 = vld [vmem:[%s1664_s18 + $0x60] ss:$8 sps:$4 sm:$0xff]   ;;  %v1219_v24 = vld [vmem:[%s1664_s18 + $0x74] ss:$8 sps:$4 sm:$0xff]   ;;  %v1222_v26 = vld [vmem:[%s1664_s18 + $0x70] ss:$8 sps:$4 sm:$0xff]  }
  0x93   : > { %v720_v27 = vld [vmem:[#allocation8] sm:$0xff]  ;;  %v721_v28 = vld [vmem:[#allocation8 + $0x8] sm:$0xff]  ;;  %v722_v31 = vld [vmem:[#allocation8 + $0x10] sm:$0xff]  ;;  %vm761_vm7 = vcmask 1046534   ;;  %vm763_vm8 = vcmask 1047559   ;;  %s965_s19 = sshll.u32 %s1660_s16, 3 }
  0x94   : > { %515 = vmatpush1.bf16.msra.mxu0 %v1191_v3  ;;  %1096 = vmatpush1.bf16.msra.mxu1 %v1191_v3  ;;  %v1061_v29 = vpack.c.bf16 %v721_v28, %v720_v27  ;;  %v723_v32 = vld [vmem:[#allocation8 + $0x18] sm:$0xff]  ;;  %v724_v34 = vld [vmem:[#allocation8 + $0x20] sm:$0xff]  ;;  %v725_v35 = vld [vmem:[#allocation8 + $0x28] sm:$0xff]  ;;  %s1003_s10 = sshll.u32 %s1482_s25, 7  ;;  %s314_s1 = scalar_lea.vmem [#allocation10], %s965_s19 }
  0x95   : > { %516 = vmatprep.subr.bf16.mxu0 %v1421_v0  ;;  %1087 = vmatprep.subr.bf16.mxu1 %v1421_v0  ;;  %v1064_v33 = vpack.c.bf16 %v723_v32, %v722_v31  ;;  %v1067_v36 = vpack.c.bf16 %v725_v35, %v724_v34  ;;  %v726_v37 = vld [vmem:[#allocation8 + $0x30] sm:$0xff]  ;;  %v727_v38 = vld [vmem:[#allocation8 + $0x38] sm:$0xff]  ;;  %v728_v40 = vld [vmem:[#allocation8 + $0x40] sm:$0xff]  ;;  %s851_s26 = sshll.u32 %s314_s1, 4  ;;  %s1755_s8 = scalar_lea.hbm %s1805_s6, %s1003_s10  ;;  %s1757_s26 = int_to_ptr.vmem [resolvable:$true] %s851_s26 }
  0x96   : > { %v1070_v39 = vpack.c.bf16 %v727_v38, %v726_v37  ;;  %v729_v41 = vld [vmem:[#allocation8 + $0x48] sm:$0xff]  ;;  %v730_v43 = vld [vmem:[#allocation8 + $0x50] sm:$0xff]  ;;  %v731_v44 = vld [vmem:[#allocation8 + $0x58] sm:$0xff]  ;;  %s838_s14 = scalar_lea.sflag [#allocation4], %s1660_s16  ;;  %s1337_s15 = scalar_lea.vmem %s1757_s26, 128 }
  0x97   : > { %v1073_v42 = vpack.c.bf16 %v729_v41, %v728_v40  ;;  %v1076_v45 = vpack.c.bf16 %v731_v44, %v730_v43  ;;  %v732_v46 = vld [vmem:[#allocation8 + $0x60] sm:$0xff]  ;;  %v733_v47 = vld [vmem:[#allocation8 + $0x68] sm:$0xff]  ;;  %v734_v49 = vld [vmem:[#allocation8 + $0x70] sm:$0xff]  ;;  %p1338_p10 = scmp.ne.s32.totalorder %s1757_s26, %s1337_s15  ;;  %s1425_s25 = smov [#allocation10]  }
  0x98   : > { %517 = vmatpush1.bf16.msra.mxu0 %v1192_v4  ;;  %1097 = vmatpush1.bf16.msra.mxu1 %v1192_v4  ;;  %v1079_v48 = vpack.c.bf16 %v733_v47, %v732_v46  ;;  %v735_v50 = vld [vmem:[#allocation8 + $0x78] sm:$0xff]  ;;  %v1705_v53 = vld [vmem:[%s1801_s2] ss:$0 sm:$0xff]  ;;  %v1711_v4 = vld [vmem:[#allocation7] sm:$0xff]  ;;  %s1341_s17 = sshll.u32 %s1425_s25, 4  ;;  %s1342_s17 = int_to_ptr.vmem [resolvable:$false] %s1341_s17 }
  0x99   : > { %518 = vmatprep.subr.bf16.mxu0 %v1421_v0  ;;  %1088 = vmatprep.subr.bf16.mxu1 %v1421_v0  ;;  %v1082_v51 = vpack.c.bf16 %v735_v50, %v734_v49  ;;  %v1713_v5 = vld [vmem:[#allocation7 + $0x8] sm:$0xff]  ;;  %p1339_p3 = pnand %p1338_p10, %p1609_p5  ;;  %s1343_s18 = scalar_lea.vmem %s1342_s17, 256 }
  0x9a   : > { %p1344_p12 = scmp.lt.s32.totalorder %s1757_s26, %s1342_s17  ;;  %p1345_p2 = scmp.lt.s32.totalorder %s1343_s18, %s1337_s15 }
  0x9b   : > { %p1340_p7 = pneg %p1339_p3 }
  0x9c   : > { %519 = vmatpush1.bf16.msra.mxu0 %v1193_v7  ;;  %1098 = vmatpush1.bf16.msra.mxu1 %v1193_v7  ;;  %p1346_p1 = por %p1345_p2, %p1344_p12 }
  0x9d   : > { %520 = vmatprep.subr.bf16.mxu0 %v1421_v0  ;;  %1089 = vmatprep.subr.bf16.mxu1 %v1421_v0 }
  0x9e   : > { %p1347_p4 = pnand %p1346_p1, %p1340_p7 }
  0xa0   : > { %521 = vmatpush1.bf16.msra.mxu0 %v1194_v8  ;;  %1099 = vmatpush1.bf16.msra.mxu1 %v1194_v8 }
  0xa1   : > { %522 = vmatprep.subr.bf16.mxu0 %v1421_v0  ;;  %1090 = vmatprep.subr.bf16.mxu1 %v1421_v0 }
  0xa4   : > { %523 = vmatpush1.bf16.msra.mxu0 %v1195_v9  ;;  %1100 = vmatpush1.bf16.msra.mxu1 %v1195_v9 }
  0xa5   : > { %524 = vmatprep.subr.bf16.mxu0 %v1421_v0  ;;  %1091 = vmatprep.subr.bf16.mxu1 %v1421_v0 }
  0xa8   : > { %525 = vmatpush1.bf16.msra.mxu0 %v1196_v10  ;;  %1101 = vmatpush1.bf16.msra.mxu1 %v1196_v10 }
  0xa9   : > { %526 = vmatprep.subr.bf16.mxu0 %v1421_v0  ;;  %1092 = vmatprep.subr.bf16.mxu1 %v1421_v0 }
  0xac   : > { %527 = vmatpush1.bf16.msra.mxu0 %v1197_v11  ;;  %1102 = vmatpush1.bf16.msra.mxu1 %v1197_v11 }
  0xad   : > { %528 = vmatprep.subr.bf16.mxu0 %v1421_v0  ;;  %1093 = vmatprep.subr.bf16.mxu1 %v1421_v0 }
  0xb0   : > { %529 = vmatpush1.bf16.msra.mxu0 %v1198_v12  ;;  %1103 = vmatpush1.bf16.msra.mxu1 %v1198_v12 }
  0xb1   : > { %1060 = vmatprep.subr.bf16.mxu1 %v1422_v30 }
  0xb3   : > { %543 = vmatmul.mubr.bf16.vlgmr.msra.gmra.mrb[0].mxu0 %v1199_v13  ;;  %575 = vmatmul.mubr.bf16.vlgmr.msra.gmra.mrb[0].mxu1 %v1202_v14 }
  0xb4   : > { %993 = vmatprep.mubr.msk.bf16.mxu0 %vm485_vm0, %v1205_v15  ;;  %997 = vmatprep.mubr.msk.bf16.mxu1 %vm485_vm0, %v1207_v16 }
  0xb5   : > { %1062 = vmatpush3.bf16.msra.mxu1 %v1061_v29 }
  0xb6   : > { %1063 = vmatprep.subr.bf16.mxu1 %v1422_v30 }
  0xb9   : > { %1065 = vmatpush3.bf16.msra.mxu1 %v1064_v33 }
  0xba   : > { %1066 = vmatprep.subr.bf16.mxu1 %v1422_v30 }
  0xbb   : > { %551 = vmatmul.mubr.bf16.gmra.mrb[4].mxu0 %v1209_v17  ;;  %583 = vmatmul.mubr.bf16.gmra.mrb[4].mxu1 %v1210_v18 }
  0xbc   : > { %994 = vmatprep.mubr.msk.bf16.mxu0 %vm485_vm0, %v1211_v19  ;;  %998 = vmatprep.mubr.msk.bf16.mxu1 %vm485_vm0, %v1213_v20 }
  0xbd   : > { %1068 = vmatpush3.bf16.msra.mxu1 %v1067_v36 }
  0xbe   : > { %1069 = vmatprep.subr.bf16.mxu1 %v1422_v30 }
  0xc1   : > { %1071 = vmatpush3.bf16.msra.mxu1 %v1070_v39 }
  0xc2   : > { %1072 = vmatprep.subr.bf16.mxu1 %v1422_v30 }
  0xc3   : > { %559 = vmatmul.mubr.bf16.gmra.mrb[8].mxu0 %v1215_v21  ;;  %591 = vmatmul.mubr.bf16.gmra.mrb[8].mxu1 %v1216_v22 }
  0xc4   : > { %995 = vmatprep.mubr.msk.bf16.mxu0 %vm485_vm0, %v1217_v23  ;;  %999 = vmatprep.mubr.msk.bf16.mxu1 %vm485_vm0, %v1219_v24 }
  0xc5   : > { %1074 = vmatpush3.bf16.msra.mxu1 %v1073_v42 }
  0xc6   : > { %1075 = vmatprep.subr.bf16.mxu1 %v1422_v30 }
  0xc9   : > { %1077 = vmatpush3.bf16.msra.mxu1 %v1076_v45 }
  0xca   : > { %1078 = vmatprep.subr.bf16.mxu1 %v1422_v30 }
  0xcb   : > { %567 = vmatmul.mubr.bf16.gmra.mrb[12].mxu0 %v1221_v25  ;;  %599 = vmatmul.mubr.bf16.gmra.mrb[12].mxu1 %v1222_v26 }
  0xcc   : > { %1057 = vmatprep.mubr.msk.f32.mxu1 %vm1423_vm1, %v1424_v52 }
  0xcd   : > { %1080 = vmatpush3.bf16.msra.mxu1 %v1079_v48 }
  0xce   : > { %1081 = vmatprep.subr.bf16.mxu1 %v1422_v30 }
  0xd1   : > { %1083 = vmatpush3.bf16.msra.mxu1 %v1082_v51 }
 0x186   : > { %v544_v54 = vpop.f32.mrb[0].mxu0  ;;  %v576_v55 = vpop.f32.mrb[0].mxu1 }
 0x187   : > { %v614_v56 = vadd.f32 %v1705_v53, %v544_v54  ;;  %v622_v57 = vadd.f32 %v1705_v53, %v576_v55  ;;  %v546_v58 = vpop.f32.mrb[1].mxu0  ;;  %v578_v59 = vpop.f32.mrb[1].mxu1 }
 0x188   : > { %v547_v60 = vpop.f32.mrb[2].mxu0  ;;  %v579_v61 = vpop.f32.mrb[2].mxu1 }
 0x189   : > { %v630_v62 = vmax.f32 %v614_v56, 0.0  ;;  %v638_v63 = vmax.f32 %v622_v57, 0.0  ;;  %v615_v0 = vadd.f32 %v1705_v53, %v547_v60  ;;  %v623_v1 = vadd.f32 %v1705_v53, %v579_v61  ;;  %v549_v2 = vpop.f32.mrb[3].mxu0  ;;  %v581_v3 = vpop.f32.mrb[3].mxu1 }
 0x18b   : > { %v656_v6 = vmul.f32 %v1711_v4, %v638_v63  ;;  %v631_v7 = vmax.f32 %v615_v0, 0.0  ;;  %v639_v8 = vmax.f32 %v623_v1, 0.0  ;;  %v648_v9 = vmul.f32 %v1711_v4, %v630_v62 }
 0x18d   : > { %v649_v10 = vmul.f32 %v1713_v5, %v631_v7  ;;  %v657_v11 = vmul.f32 %v1713_v5, %v639_v8 }
 0x18e   : > { %v552_v12 = vpop.f32.mrb[4].mxu0  ;;  %v584_v13 = vpop.f32.mrb[4].mxu1 }
 0x18f   : > { %v664_v14 = vmax.f32 %v648_v9, %v649_v10  ;;  %v1719_v15 = vmax.f32 %v656_v6, %v657_v11  ;;  %v616_v16 = vadd.f32 %v1705_v53, %v552_v12  ;;  %v624_v17 = vadd.f32 %v1705_v53, %v584_v13  ;;  %v554_v18 = vpop.f32.mrb[5].mxu0  ;;  %v586_v19 = vpop.f32.mrb[5].mxu1 }
 0x190   : > { %v555_v20 = vpop.f32.mrb[6].mxu0  ;;  %v587_v21 = vpop.f32.mrb[6].mxu1 }
 0x191   : > { %v665_v22 = vrot.slane %v664_v14, 4  ;;  %v640_v23 = vmax.f32 %v624_v17, 0.0  ;;  %v557_v24 = vpop.f32.mrb[7].mxu0  ;;  %v589_v25 = vpop.f32.mrb[7].mxu1  ;;  %v632_v26 = vmax.f32 %v616_v16, 0.0  ;;  %v617_v27 = vadd.f32 %v1705_v53, %v555_v20 }
 0x192   : > { %v625_v28 = vadd.f32 %v1705_v53, %v587_v21  ;;  %v693_v3 = vrot.slane %v1719_v15, 4 }
 0x193   : > { %v666_v29 = vmax.f32 %v664_v14, %v665_v22  ;;  %v658_v30 = vmul.f32 %v1711_v4, %v640_v23  ;;  %v633_v31 = vmax.f32 %v617_v27, 0.0  ;;  %v650_v33 = vmul.f32 %v1711_v4, %v632_v26 }
 0x194   : > { %v641_v32 = vmax.f32 %v625_v28, 0.0 }
 0x195   : > { %v651_v34 = vmul.f32 %v1713_v5, %v633_v31  ;;  %v667_v38 = vrot.slane %v666_v29, 2 }
 0x196   : > { %v659_v35 = vmul.f32 %v1713_v5, %v641_v32  ;;  %v560_v36 = vpop.f32.mrb[8].mxu0  ;;  %v592_v37 = vpop.f32.mrb[8].mxu1 }
 0x197   : > { %v618_v39 = vadd.f32 %v1705_v53, %v560_v36  ;;  %v626_v40 = vadd.f32 %v1705_v53, %v592_v37  ;;  %v562_v41 = vpop.f32.mrb[9].mxu0  ;;  %v594_v42 = vpop.f32.mrb[9].mxu1  ;;  %v671_v43 = vmax.f32 %v650_v33, %v651_v34  ;;  %v668_v55 = vmax.f32 %v666_v29, %v667_v38 }
 0x198   : > { %v699_v44 = vmax.f32 %v658_v30, %v659_v35  ;;  %v563_v45 = vpop.f32.mrb[10].mxu0  ;;  %v595_v46 = vpop.f32.mrb[10].mxu1  ;;  %v694_v30 = vmax.f32 %v1719_v15, %v693_v3 }
 0x199   : > { %v642_v47 = vmax.f32 %v626_v40, 0.0  ;;  %v565_v48 = vpop.f32.mrb[11].mxu0  ;;  %v597_v49 = vpop.f32.mrb[11].mxu1  ;;  %v672_v50 = vrot.slane %v671_v43, 4  ;;  %v634_v51 = vmax.f32 %v618_v39, 0.0  ;;  %v619_v52 = vadd.f32 %v1705_v53, %v563_v45 }
 0x19a   : > { %v627_v54 = vadd.f32 %v1705_v53, %v595_v46  ;;  %v669_v2 = vrot.slane %v668_v55, 1  ;;  %v700_v11 = vrot.slane %v699_v44, 4  ;;  %v695_v41 = vrot.slane %v694_v30, 2 }
 0x19b   : > { %v673_v56 = vmax.f32 %v671_v43, %v672_v50  ;;  %v660_v57 = vmul.f32 %v1711_v4, %v642_v47  ;;  %v635_v58 = vmax.f32 %v619_v52, 0.0  ;;  %v652_v61 = vmul.f32 %v1711_v4, %v634_v51 }
 0x19c   : > { %v643_v59 = vmax.f32 %v627_v54, 0.0  ;;  %v670_v29 = vmax.f32 %v668_v55, %v669_v2  ;;  %v701_v33 = vmax.f32 %v699_v44, %v700_v11 }
 0x19d   : > { %v674_v60 = vrot.slane %v673_v56, 2  ;;  %v653_v62 = vmul.f32 %v1713_v5, %v635_v58 }
 0x19e   : > { %v661_v63 = vmul.f32 %v1713_v5, %v643_v59  ;;  %v568_v0 = vpop.f32.mrb[12].mxu0  ;;  %v600_v1 = vpop.f32.mrb[12].mxu1  ;;  %v702_v43 = vrot.slane %v701_v33, 2 }
 0x19f   : > { %v620_v6 = vadd.f32 %v1705_v53, %v568_v0  ;;  %v628_v7 = vadd.f32 %v1705_v53, %v600_v1  ;;  %v570_v8 = vpop.f32.mrb[13].mxu0  ;;  %v602_v9 = vpop.f32.mrb[13].mxu1  ;;  %v675_v10 = vmax.f32 %v673_v56, %v674_v60  ;;  %v678_v12 = vmax.f32 %v652_v61, %v653_v62 }
 0x1a0   : > { %v706_v13 = vmax.f32 %v660_v57, %v661_v63  ;;  %v571_v14 = vpop.f32.mrb[14].mxu0  ;;  %v603_v16 = vpop.f32.mrb[14].mxu1  ;;  %v703_v50 = vmax.f32 %v701_v33, %v702_v43 }
 0x1a1   : > { %v636_v17 = vmax.f32 %v620_v6, 0.0  ;;  %v644_v18 = vmax.f32 %v628_v7, 0.0  ;;  %v621_v19 = vadd.f32 %v1705_v53, %v571_v14  ;;  %v629_v20 = vadd.f32 %v1705_v53, %v603_v16  ;;  %v573_v21 = vpop.f32.mrb[15].mxu0  ;;  %v605_v22 = vpop.f32.mrb[15].mxu1 }
 0x1a2   : > { %v676_v23 = vrot.slane %v675_v10, 1  ;;  %v679_v24 = vrot.slane %v678_v12, 4  ;;  %v707_v25 = vrot.slane %v706_v13, 4  ;;  %v704_v58 = vrot.slane %v703_v50, 1 }
 0x1a3   : > { %v662_v26 = vmul.f32 %v1711_v4, %v644_v18  ;;  %v637_v27 = vmax.f32 %v621_v19, 0.0  ;;  %v645_v28 = vmax.f32 %v629_v20, 0.0  ;;  %v654_v34 = vmul.f32 %v1711_v4, %v636_v17 }
 0x1a4   : > { %v677_v31 = vmax.f32 %v675_v10, %v676_v23  ;;  %v680_v32 = vmax.f32 %v678_v12, %v679_v24  ;;  %v708_v38 = vmax.f32 %v706_v13, %v707_v25  ;;  %v696_v4 = vmax.f32 %v694_v30, %v695_v41  ;;  %v1001_v10 = vld [vmem:[%s1804_s5] ss:$0 sm:$0xff] }
 0x1a5   : > { %v655_v53 = vmul.f32 %v1713_v5, %v637_v27  ;;  %v663_v35 = vmul.f32 %v1713_v5, %v645_v28  ;;  %v705_v0 = vmax.f32 %v703_v50, %v704_v58 }
 0x1a6   : > { %v752_v36 = vsel %vm751_vm2, %v677_v31, %v670_v29  ;;  %v681_v37 = vrot.slane %v680_v32, 2  ;;  %v709_v47 = vrot.slane %v708_v38, 2  ;;  %v697_v57 = vrot.slane %v696_v4, 1 }
 0x1a7   : > { %v685_v39 = vmax.f32 %v654_v34, %v655_v53  ;;  %v713_v40 = vmax.f32 %v662_v26, %v663_v35 }
 0x1a8   : > { %v682_v42 = vmax.f32 %v680_v32, %v681_v37  ;;  %v710_v54 = vmax.f32 %v708_v38, %v709_v47  ;;  %v698_v63 = vmax.f32 %v696_v4, %v697_v57 }
 0x1a9   : > { %v686_v45 = vrot.slane %v685_v39, 4  ;;  %v714_v46 = vrot.slane %v713_v40, 4 }
 0x1aa   : > { %v683_v15 = vrot.slane %v682_v42, 1  ;;  %v711_v60 = vrot.slane %v710_v54, 1 }
 0x1ab   : > { %v687_v44 = vmax.f32 %v685_v39, %v686_v45  ;;  %v715_v48 = vmax.f32 %v713_v40, %v714_v46 }
 0x1ac   : > { %v684_v49 = vmax.f32 %v682_v42, %v683_v15  ;;  %v712_v2 = vmax.f32 %v710_v54, %v711_v60 }
 0x1ad   : > { %v688_v51 = vrot.slane %v687_v44, 2  ;;  %v716_v5 = vrot.slane %v715_v48, 2 }
 0x1ae   : > { %v754_v52 = vsel %vm753_vm3, %v684_v49, %v752_v36 }
 0x1af   : > { %v689_v55 = vmax.f32 %v687_v44, %v688_v51  ;;  %v717_v56 = vmax.f32 %v715_v48, %v716_v5 }
 0x1b1   : > { %v690_v59 = vrot.slane %v689_v55, 1  ;;  %v718_v62 = vrot.slane %v717_v56, 1 }
 0x1b3   : > { %v691_v61 = vmax.f32 %v689_v55, %v690_v59  ;;  %v719_v6 = vmax.f32 %v717_v56, %v718_v62 }
 0x1b5   : > { %v756_v1 = vsel %vm755_vm4, %v691_v61, %v754_v52 }
 0x1b6   : > { %v758_v3 = vsel %vm757_vm5, %v698_v63, %v756_v1 }
 0x1b7   : > { %v760_v7 = vsel %vm759_vm6, %v705_v0, %v758_v3 }
 0x1b8   : > { %v762_v8 = vsel %vm761_vm7, %v712_v2, %v760_v7 }
 0x1b9   : > { %v764_v9 = vsel %vm763_vm8, %v719_v6, %v762_v8 }
 0x1ba   : > { %1058 = vmatmul.mubr.f32.vlgmr.msra.gmra.mrb[16].mxu1 %v764_v9 }
 0x28d   : > { %v832_v11 = vpop.f32.mrb[16].mxu1 }
 0x28e   : > { %v833_v12 = vadd.f32 %v1001_v10, %v832_v11  ;;  %v1059_v13 = vpop.f32.mrb[17].mxu1 }
 0x290   : > { %836 = vst [vmem:[%s314_s1] sm:$0xff] %v833_v12 }
 0x291   : > { %1350 = shalt.err (!%p1347_p4)
}
 0x292   : > { %s1351_s16 = scalar_lea.hbm %s1755_s8, 128  ;;  %s1355_s19 = scalar_lea.hbm %s1805_s6, 256 }
 0x293   : > { %p1352_p9 = scmp.ne.s32.totalorder %s1755_s8, %s1351_s16  ;;  %p1356_p8 = scmp.lt.u32.totalorder %s1755_s8, %s1805_s6 }
 0x294   : > { %p1357_p13 = scmp.lt.u32.totalorder %s1355_s19, %s1351_s16  ;;  %p1359_p10 = scmp.lt.u32.totalorder %s1351_s16, %s1755_s8 }
 0x295   : > { %p1353_p0 = pnand %p1352_p9, %p1609_p5 }
 0x296   : > { %p1358_p6 = por %p1357_p13, %p1356_p8 }
 0x297   : > { %p1354_p11 = pneg %p1353_p0 }
 0x298   : > { %p1360_p3 = por %p1359_p10, %p1358_p6 }
 0x29a   : > { %p1361_p7 = pnand %p1360_p3, %p1354_p11 }
 0x29c   : > { %1364 = shalt.err (!%p1361_p7)
}
 0x29d   : > { %1118 = dma.vmem_to_hbm [thread:$0]  (%p1609_p5), %s1757_s26, 128, %s1755_s8, %s838_s14  }
 0x29e PF: > { %s863_s10 = sand.u32 1, %s1399_s21   ;;  %p1825_p12 = scmp.ne.s32.totalorder %s1811_s28, 0 }
 0x29f   : > { %p1826_p2 = scmp.ge.s32.totalorder %s1411_s24, 2  ;;  %s864_s1 = scalar_lea.sflag [#allocation4], %s863_s10 }
 0x2a1   : > { %p1135_p1 = pnand %p1826_p2, %p1825_p12 }
 0x2a3   : > { %1394 = dma.done.wait (!%p1135_p1), %s864_s1, 128  }
 0x2a4   : > { %1396 = vsyncadd (!%p1135_p1), %s864_s1, 4294967168  ;;  %p21_p4 = scmp.ge.s32.totalorder %s1574_s12, 4   ;;  %s1827_s21 = smov %s1403_s22 }
 0x2a5   : > { %s1828_s22 = smov %s1407_s23  ;;  %s1829_s23 = smov %s1605_s30 }
 0x2a6   : > { %s1830_s24 = smov %s1574_s12  ;;  %23 = sbr.rel (!%p21_p4) target bundleno = 9 (0x9), region = 101 }
 0x2ad   :  { %869 = vsyncpa [#allocation3], 1 }
 0x2ae   :  { %871 = vsyncpa [#allocation3 + $0x1], 1 }
 0x2af   :  { %872 = vsyncpa [#allocation6], 1 }
 0x2b0   :  { %873 = vsyncpa [#allocation9], 1 }
 0x2b1   :  { %874 = vsyncpa [#allocation4], 1 }
 0x2b2   :  { %876 = vsyncpa [#allocation4 + $0x1], 1 }

</bundles_post_ra>
